<compile_context>
chip_gen: v6e
topology: v6e:2x2x1
jax: 0.10.0
libtpu: 0.0.40
codegen_flags: <defaults>
</compile_context>

<pallas_src>
import functools

import jax
import jax.numpy as jnp
from jax.experimental import pallas as pl
from jax.experimental.pallas import tpu as pltpu


def _round_up(x, m):
    return ((x + m - 1) // m) * m


def _matmul_bias_lrelu_kernel(lhs_ref, w_ref, b_ref, o_ref, *, neg_slope):
    # lhs_ref: (tile_m, K)        bf16  im2col patch tile (K = KH*KW*Cin)
    # w_ref:   (K, Cout_pad)      bf16  BN-scale-folded weights (resident across steps)
    # b_ref:   (1, Cout_pad)      f32   folded BN bias (resident)
    # o_ref:   (tile_m, Cout_pad) bf16
    acc = jnp.dot(lhs_ref[...], w_ref[...],
                  preferred_element_type=jnp.float32)      # one MXU dot, f32 accum
    y = acc + b_ref[...]                                    # folded-BN bias add (f32)
    y = jnp.where(y > 0, y, neg_slope * y)                  # LeakyReLU(0.01) in f32
    o_ref[...] = y.astype(o_ref.dtype)                      # bf16 store (lane-dense)


def basic_block_forward(x_nchw, weight, gamma, beta, running_mean, running_var,
                        *, stride=1, eps=1e-5, neg_slope=0.01, num_grid_steps=2):
    """x_nchw: (N, Cin, H, W); weight: (Cout, Cin, KH, KW) (torch layouts).

    num_grid_steps: 2 (default) shards work across both TensorCores on v7x;
    use 1 on v5e/v6e (single TC) to remove the last ~0.35 us of grid-step overhead.
    """
    n, cin, h, w = x_nchw.shape
    cout, _, kh, kw = weight.shape
    ho = (h - kh) // stride + 1
    wo = (w - kw) // stride + 1
    k_dim = kh * kw * cin
    cout_pad = _round_up(cout, 128)               # lane-dense output channels

    # ---- wrapper-side layout plumbing: bf16 first, then transpose + im2col ----
    x_bf16 = x_nchw.astype(jnp.bfloat16)
    x_nhwc = jnp.transpose(x_bf16, (0, 2, 3, 1))  # (N, H, W, Cin) bf16

    # im2col / space-to-depth: strided slicing handled by XLA outside the kernel,
    # so stride > 1 needs no in-kernel gather.  Tap order (kh, kw, ci) matches the
    # weight flattening below.
    taps = []
    for kh_i in range(kh):
        for kw_i in range(kw):
            taps.append(x_nhwc[:, kh_i:kh_i + stride * ho:stride,
                               kw_i:kw_i + stride * wo:stride, :])
    patches = jnp.concatenate(taps, axis=-1)       # (N, Ho, Wo, KH*KW*Cin) bf16
    m_total = n * ho * wo
    lhs = patches.reshape(m_total, k_dim)

    num_grid_steps = max(1, min(num_grid_steps, pl.cdiv(m_total, 8)))
    tile_m = _round_up(pl.cdiv(m_total, num_grid_steps), 8)   # sublane-aligned M tile
    m_pad = tile_m * num_grid_steps
    lhs = jnp.pad(lhs, ((0, m_pad - m_total), (0, 0)))

    # ---- BN folding (exact, f32), then bf16 weight matrix ----
    scale = gamma.astype(jnp.float32) / jnp.sqrt(running_var.astype(jnp.float32) + eps)
    bias = beta.astype(jnp.float32) - running_mean.astype(jnp.float32) * scale
    w_hwio = jnp.transpose(weight, (2, 3, 1, 0)).astype(jnp.float32)   # (KH, KW, Cin, Cout)
    w_folded = w_hwio * scale[None, None, None, :]                     # fold BN scale
    w_mat = w_folded.reshape(k_dim, cout)                              # (KH*KW*Cin, Cout)
    w_mat = jnp.pad(w_mat, ((0, 0), (0, cout_pad - cout))).astype(jnp.bfloat16)
    bias_pad = jnp.pad(bias, (0, cout_pad - cout)).reshape(1, cout_pad).astype(jnp.float32)

    kernel = functools.partial(_matmul_bias_lrelu_kernel, neg_slope=neg_slope)

    out_flat = pl.pallas_call(
        kernel,
        out_shape=jax.ShapeDtypeStruct((m_pad, cout_pad), jnp.bfloat16),
        grid_spec=pltpu.PrefetchScalarGridSpec(
            num_scalar_prefetch=0,
            grid=(num_grid_steps,),
            in_specs=[
                pl.BlockSpec((tile_m, k_dim), lambda i: (i, 0)),
                pl.BlockSpec((k_dim, cout_pad), lambda i: (0, 0)),
                pl.BlockSpec((1, cout_pad), lambda i: (0, 0)),
            ],
            out_specs=pl.BlockSpec((tile_m, cout_pad), lambda i: (i, 0)),
        ),
        compiler_params=pltpu.CompilerParams(
            dimension_semantics=("parallel",)),
    )(lhs, w_mat, bias_pad)

    out = out_flat[:m_total].reshape(n, ho, wo, cout_pad)[..., :cout]
    # Back to torch NCHW f32 for module parity (a chained model would skip this).
    return jnp.transpose(out, (0, 3, 1, 2)).astype(jnp.float32)


def _reference(x_nchw, weight, gamma, beta, running_mean, running_var,
               *, stride=1, eps=1e-5, neg_slope=0.01, bf16_operands=False):
    scale = gamma / jnp.sqrt(running_var + eps)
    bias = beta - running_mean * scale
    w = weight.astype(jnp.float32) * scale[:, None, None, None]
    xx = x_nchw.astype(jnp.float32)
    if bf16_operands:
        w = w.astype(jnp.bfloat16)
        xx = xx.astype(jnp.bfloat16)
    y = jax.lax.conv_general_dilated(
        xx, w, window_strides=(stride, stride), padding="VALID",
        dimension_numbers=("NCHW", "OIHW", "NCHW"),
        preferred_element_type=jnp.float32)
    y = y + bias[None, :, None, None]
    return jnp.where(y > 0, y, neg_slope * y)


def _check(x, weight, gamma, beta, running_mean, running_var, *, stride):
    out = basic_block_forward(x, weight, gamma, beta, running_mean, running_var,
                              stride=stride)
    out = jax.block_until_ready(out)

    n, cin, h, w = x.shape
    cout, _, k, _ = weight.shape
    ho = (h - k) // stride + 1
    wo = (w - k) // stride + 1
    assert out.shape == (n, cout, ho, wo)

    # Tight check against the same bf16-operand / f32-accumulation computation
    # (tolerance includes the bf16 output store rounding).
    ref_bf16 = _reference(x, weight, gamma, beta, running_mean, running_var,
                          stride=stride, bf16_operands=True)
    assert jnp.allclose(out, ref_bf16, atol=2e-2, rtol=2e-2)
    # Sanity check against pure-f32 module semantics.
    ref_f32 = _reference(x, weight, gamma, beta, running_mean, running_var,
                         stride=stride, bf16_operands=False)
    assert jnp.allclose(out, ref_f32, atol=1e-1, rtol=5e-2)


if __name__ == "__main__":
    # Small shapes consistent with the module: batch=2, in_channels=4,
    # out_channels=8, kernel_size=3, spatial=16.
    N, CIN, H, W = 2, 4, 16, 16
    COUT, K = 8, 3

    key = jax.random.PRNGKey(0)
    kx, kw_, kg, kb, km, kv = jax.random.split(key, 6)
    x = jax.random.normal(kx, (N, CIN, H, W), dtype=jnp.float32)
    weight = jax.random.normal(kw_, (COUT, CIN, K, K), dtype=jnp.float32) * 0.1
    gamma = 1.0 + 0.1 * jax.random.normal(kg, (COUT,), dtype=jnp.float32)
    beta = 0.1 * jax.random.normal(kb, (COUT,), dtype=jnp.float32)
    running_mean = 0.1 * jax.random.normal(km, (COUT,), dtype=jnp.float32)
    running_var = jnp.abs(1.0 + 0.1 * jax.random.normal(kv, (COUT,),
                                                        dtype=jnp.float32))

    _check(x, weight, gamma, beta, running_mean, running_var, stride=1)
    # stride > 1 path (wrapper-side strided im2col) is now exercised too.
    _check(x, weight, gamma, beta, running_mean, running_var, stride=2)
    print("KERNEL_OK")
</pallas_src>

<mosaic_0001>
module attributes {stable_mosaic.version = 11 : i64} {
  func.func @_matmul_bias_lrelu_kernel(%arg0: i32, %arg1: memref<200x36xbf16, #tpu.memory_space<vmem>>, %arg2: memref<36x128xbf16, #tpu.memory_space<vmem>>, %arg3: memref<1x128xf32, #tpu.memory_space<vmem>>, %arg4: memref<200x128xbf16, #tpu.memory_space<vmem>>) attributes {dimension_semantics = [#tpu.dimension_semantics<parallel>], iteration_bounds = array<i64: 2>, scalar_prefetch = 0 : i64, scratch_operands = 0 : i64, tpu.core_type = #tpu.core_type<tc>, window_params = [{transform_indices = @transform_0, window_bounds = array<i64: 200, 36>}, {pipeline_mode = #tpu.pipeline_mode<synchronous>, transform_indices = @transform_1, window_bounds = array<i64: 36, 128>}, {pipeline_mode = #tpu.pipeline_mode<synchronous>, transform_indices = @transform_2, window_bounds = array<i64: 1, 128>}, {transform_indices = @transform_3, window_bounds = array<i64: 200, 128>}]} {
    %c0 = arith.constant 0 : index
    %c0_0 = arith.constant 0 : index
    %0 = vector.load %arg1[%c0, %c0_0] : memref<200x36xbf16, #tpu.memory_space<vmem>>, vector<200x36xbf16>
    %c0_1 = arith.constant 0 : index
    %c0_2 = arith.constant 0 : index
    %1 = vector.load %arg2[%c0_1, %c0_2] : memref<36x128xbf16, #tpu.memory_space<vmem>>, vector<36x128xbf16>
    %cst = arith.constant dense<0.000000e+00> : vector<200x128xf32>
    %2 = tpu.matmul %0, %1, %cst {dimension_numbers = #tpu.dot_dimension_numbers<[1], [0], [0], [1], [0, 0, 1, 1], [], []>} : vector<200x36xbf16>, vector<36x128xbf16>, vector<200x128xf32> -> vector<200x128xf32>
    %c0_3 = arith.constant 0 : index
    %c0_4 = arith.constant 0 : index
    %3 = vector.load %arg3[%c0_3, %c0_4] : memref<1x128xf32, #tpu.memory_space<vmem>>, vector<1x128xf32>
    %4 = vector.broadcast %3 : vector<1x128xf32> to vector<200x128xf32>
    %5 = arith.addf %2, %4 : vector<200x128xf32>
    %cst_5 = arith.constant 0.000000e+00 : f32
    %6 = vector.broadcast %cst_5 : f32 to vector<200x128xf32>
    %7 = arith.cmpf ogt, %5, %6 : vector<200x128xf32>
    %cst_6 = arith.constant 0.00999999977 : f32
    %8 = vector.broadcast %cst_6 : f32 to vector<200x128xf32>
    %9 = arith.mulf %8, %5 : vector<200x128xf32>
    %10 = arith.select %7, %5, %9 : vector<200x128xi1>, vector<200x128xf32>
    %11 = arith.truncf %10 : vector<200x128xf32> to vector<200x128xbf16>
    %c0_7 = arith.constant 0 : index
    %c0_8 = arith.constant 0 : index
    %12 = vector.load %arg4[%c0_7, %c0_8] : memref<200x128xbf16, #tpu.memory_space<vmem>>, vector<200x128xbf16>
    tpu.vector_store %arg4[%c0_7, %c0_8], %11 {strides = array<i32>} : memref<200x128xbf16, #tpu.memory_space<vmem>>, vector<200x128xbf16>,
    return
  }
  func.func @transform_0(%arg0: i32) -> (i32, i32) {
    %c0_i32 = arith.constant 0 : i32
    %c0_i32_0 = arith.constant 0 : i32
    return %arg0, %c0_i32 : i32, i32
  }
  func.func @transform_1(%arg0: i32) -> (i32, i32) {
    %c0_i32 = arith.constant 0 : i32
    %c0_i32_0 = arith.constant 0 : i32
    %c0_i32_1 = arith.constant 0 : i32
    return %c0_i32, %c0_i32_0 : i32, i32
  }
  func.func @transform_2(%arg0: i32) -> (i32, i32) {
    %c0_i32 = arith.constant 0 : i32
    %c0_i32_0 = arith.constant 0 : i32
    %c0_i32_1 = arith.constant 0 : i32
    return %c0_i32, %c0_i32_0 : i32, i32
  }
  func.func @transform_3(%arg0: i32) -> (i32, i32) {
    %c0_i32 = arith.constant 0 : i32
    %c0_i32_0 = arith.constant 0 : i32
    return %arg0, %c0_i32 : i32, i32
  }
}

</mosaic_0001>

<bundles_post_ra>
// kernel: tpu_custom_call.1
= control target key start
LH: loop header
LB: loop body
LE: loop exit
PB: predicated region body
PF: predicated region fallthrough
CT: control target
= control target key end

     0   :  { %8 = vsyncpa [#allocation3], 0  ;;  %s1333_s0 = inlined_call_operand.vmem [shape: bf16[400,36], index: 0, kind: input, shape index: {}]   ;;  %s1334_s1 = inlined_call_operand.vmem [shape: bf16[36,128], index: 1, kind: input, shape index: {}]   ;;  %s1335_s2 = inlined_call_operand.vmem [shape: f32[1,128], index: 2, kind: input, shape index: {}]   ;;  %s1336_s3 = inlined_call_operand.hbm [shape: bf16[400,128], index: 3, kind: output, shape index: {}]  }
   0x1   :  { %10 = vsyncpa [#allocation3 + $0x1], 0  ;;  %s1132_s12 = smov 0   ;;  %s1134_s13 = smov 0  }
   0x2   :  { %s1136_s14 = smov 0   ;;  %s1138_s15 = smov 0  }
   0x3 LB: > { %s1153_s16 = sadd.s32 4294967295, %s1105_s15   ;;  %s745_s17 = sadd.s32 4294967294, %s1105_s15   ;;  %s1105_s15 = sphi %s1138_s15, %s1342_s15   ;;  %s1101_s14 = sphi %s1136_s14, %s1341_s14   ;;  %s1097_s13 = sphi %s1134_s13, %s1340_s13   ;;  %s1093_s12 = sphi %s1132_s12, %s1339_s12  }
   0x4   : > { %s1157_s18 = sadd.s32 1, %s1105_s15   ;;  %s91_s19 = sadd.s32 1, %s1101_s14 }
   0x5   : > { %s88_s20 = ssub.s32 %s1105_s15, %s1157_s18  ;;  %p101_p0 = scmp.ne.s32.totalorder %s1101_s14, %s1097_s13 }
   0x6   : > { %p89_p1 = scmp.eq.s32.totalorder %s88_s20, 0  ;;  %p102_p2 = scmp.eq.s32.totalorder %s1153_s16, 1 }
   0x7   : > { %p107_p3 = scmp.ne.s32.totalorder %s1097_s13, %s1093_s12  ;;  %p108_p4 = scmp.eq.s32.totalorder %s745_s17, 1 }
   0x8   : > { %s1168_s21 = scalar_select %p89_p1, %s1101_s14, %s91_s19  }
   0x9   : > { %p1170_p5 = por %p102_p2, %p101_p0  ;;  %p1174_p6 = por %p108_p4, %p107_p3 }
   0xa   : > { %p748_p7 = scmp.ge.s32.totalorder %s1105_s15, 1  ;;  %p141_p8 = scmp.lt.s32.totalorder %s1105_s15, 3 }
   0xc   : > { %p142_p9 = pnand %p748_p7, %p141_p8 }
   0xd   : > { %s165_s28 = smul.u32 (!%p142_p9), 25, %s1153_s16  ;;  %s162_s10 = sand.u32 (!%p142_p9), 1, %s1097_s13  }
   0xe   : > { %145 = sbr.rel (%p142_p9) target bundleno = 298 (0x12a), region = 32 }
   0xf   : > { %p166_p10 = scmp.lt.s32.totalorder (!%p142_p9), %s165_s28, 49  ;;  %s985_s11 = smul.u32 (!%p142_p9), 100, %s162_s10 }
  0x10   : > { %s833_s19 = smul.u32 (!%p142_p9), 1600, %s1153_s16  ;;  %s1293_s16 = scalar_lea.sflag (!%p142_p9), [#allocation3], %s162_s10 }
  0x11   : > { %s1248_s17 = scalar_lea.vmem (!%p142_p9), [#allocation2], %s985_s11 }
  0x12   : > { %s683_s20 = sshll.u32 (!%p142_p9), %s1248_s17, 4  ;;  %s1286_s26 = scalar_lea.hbm (!%p142_p9), %s1336_s3, %s833_s19  ;;  %s1288_s20 = int_to_ptr.vmem [resolvable:$true] %s683_s20 }
  0x13   : > { %v1029_v0 = vld [vmem:[%s1334_s1 + $0x10] ss:$0 sps:$4 sm:$0x33]   ;;  %v1107_v1 = vmov 0.0   ;;  %vm328_vm0 = vcmask 1041408   ;;  %v1030_v3 = vld [vmem:[%s1334_s1 + $0x8] sm:$0xff]  }
  0x14   : > { %921 = vmatprep.subr.bf16.mxu0 %v1107_v1  ;;  %979 = vmatprep.subr.bf16.mxu1 %v1107_v1  ;;  %v330_v2 = vsel %vm328_vm0, %v1029_v0, 0  ;;  %vm1108_vm1 = vmmov 0   ;;  %v1031_v4 = vld [vmem:[%s1334_s1] sm:$0xff]   ;;  %s1344_s28 = smov (!%p166_p10, %s165_s28), 49  ;;  %vm288_vm2 = vcmask 293888   ;;  %s1045_s27 = scalar_lea.vmem %s1288_s20, 1600 }
  0x15   : > { %922 = vmatpush3.bf16.msra.mxu0 %v330_v2  ;;  %982 = vmatpush3.bf16.msra.mxu1 %v330_v2  ;;  %s749_s4 = sshll.u32 %s1344_s28, 2  ;;  %v1237_v18 = vld [vmem:[%s1335_s2] ss:$0 sm:$0xff]  ;;  %p1046_p11 = scmp.ne.s32.totalorder %s1288_s20, %s1045_s27 }
  0x16   : > { %923 = vmatprep.subr.bf16.mxu0 %v1107_v1  ;;  %980 = vmatprep.subr.bf16.mxu1 %v1107_v1  ;;  %s1195_s7 = scalar_lea.vmem %s1333_s0, %s749_s4  ;;  %s1109_s28 = smov [#allocation2]  }
  0x17   : > { %927 = vmatprep.mubr.msk.bf16.mxu0 %vm1108_vm1, %v1107_v1  ;;  %955 = vmatprep.mubr.msk.bf16.mxu1 %vm1108_vm1, %v1107_v1  ;;  %v1032_v5 = vld [vmem:[%s1195_s7] sm:$0xff]   ;;  %v1033_v6 = vld [vmem:[%s1195_s7 + $0x38] sm:$0xff]   ;;  %v1034_v7 = vld [vmem:[%s1195_s7 + $0x8] sm:$0xff]   ;;  %p1047_p12 = pnand %p1046_p11, %p1170_p5  ;;  %s1049_s29 = sshll.u32 %s1109_s28, 4  ;;  %s1050_s29 = int_to_ptr.vmem [resolvable:$false] %s1049_s29 }
  0x18   : > { %v1035_v8 = vld [vmem:[%s1195_s7 + $0x40] sm:$0xff]   ;;  %v1036_v9 = vld [vmem:[%s1195_s7 + $0x10] sm:$0xff]   ;;  %v1037_v10 = vld [vmem:[%s1195_s7 + $0x48] sm:$0xff]   ;;  %s1051_s30 = scalar_lea.vmem %s1050_s29, 3200  ;;  %p1052_p0 = scmp.lt.s32.totalorder %s1288_s20, %s1050_s29 }
  0x19   : > { %924 = vmatpush3.bf16.msra.mxu0 %v1030_v3  ;;  %983 = vmatpush3.bf16.msra.mxu1 %v1030_v3  ;;  %v1038_v11 = vld [vmem:[%s1195_s7 + $0x18] sm:$0xff]   ;;  %v1039_v12 = vld [vmem:[%s1195_s7 + $0x50] sm:$0xff]   ;;  %v1040_v13 = vld [vmem:[%s1195_s7 + $0x20] sm:$0xff]   ;;  %p1048_p13 = pneg %p1047_p12  ;;  %p1053_p1 = scmp.lt.s32.totalorder %s1051_s30, %s1045_s27 }
  0x1a   : > { %925 = vmatprep.subr.bf16.mxu0 %v1107_v1  ;;  %981 = vmatprep.subr.bf16.mxu1 %v1107_v1  ;;  %v1041_v14 = vld [vmem:[%s1195_s7 + $0x58] sm:$0xff]   ;;  %v1042_v15 = vld [vmem:[%s1195_s7 + $0x28] sm:$0xff]   ;;  %v1043_v16 = vld [vmem:[%s1195_s7 + $0x60] ss:$0 sps:$4 sm:$0xff]  }
  0x1b   : > { %v1044_v17 = vld [vmem:[%s1195_s7 + $0x30] sm:$0xff]   ;;  %p1054_p2 = por %p1053_p1, %p1052_p0 }
  0x1d   : > { %926 = vmatpush3.bf16.msra.mxu0 %v1031_v4  ;;  %984 = vmatpush3.bf16.msra.mxu1 %v1031_v4  ;;  %p1055_p3 = pnand %p1054_p2, %p1048_p13 }
  0x20   : > { %928 = vmatmul.mubr.msk.bf16.vlgmr.msra.gmra.mxu0 %vm288_vm2, %v1032_v5  ;;  %956 = vmatmul.mubr.msk.bf16.vlgmr.msra.gmra.mxu1 %vm288_vm2, %v1033_v6 }
  0x21   : > { %931 = vmatprep.mubr.msk.bf16.mxu0 %vm1108_vm1, %v1107_v1  ;;  %959 = vmatprep.mubr.msk.bf16.mxu1 %vm1108_vm1, %v1107_v1 }
  0x28   : > { %932 = vmatmul.mubr.msk.bf16.gmra.mxu0 %vm288_vm2, %v1034_v7  ;;  %960 = vmatmul.mubr.msk.bf16.gmra.mxu1 %vm288_vm2, %v1035_v8 }
  0x29   : > { %935 = vmatprep.mubr.msk.bf16.mxu0 %vm1108_vm1, %v1107_v1  ;;  %963 = vmatprep.mubr.msk.bf16.mxu1 %vm1108_vm1, %v1107_v1 }
  0x30   : > { %936 = vmatmul.mubr.msk.bf16.gmra.mxu0 %vm288_vm2, %v1036_v9  ;;  %964 = vmatmul.mubr.msk.bf16.gmra.mxu1 %vm288_vm2, %v1037_v10 }
  0x31   : > { %939 = vmatprep.mubr.msk.bf16.mxu0 %vm1108_vm1, %v1107_v1  ;;  %967 = vmatprep.mubr.msk.bf16.mxu1 %vm1108_vm1, %v1107_v1 }
  0x38   : > { %940 = vmatmul.mubr.msk.bf16.gmra.mxu0 %vm288_vm2, %v1038_v11  ;;  %968 = vmatmul.mubr.msk.bf16.gmra.mxu1 %vm288_vm2, %v1039_v12 }
  0x39   : > { %943 = vmatprep.mubr.msk.bf16.mxu0 %vm1108_vm1, %v1107_v1  ;;  %971 = vmatprep.mubr.msk.bf16.mxu1 %vm1108_vm1, %v1107_v1 }
  0x40   : > { %944 = vmatmul.mubr.msk.bf16.gmra.mxu0 %vm288_vm2, %v1040_v13  ;;  %972 = vmatmul.mubr.msk.bf16.gmra.mxu1 %vm288_vm2, %v1041_v14 }
  0x41   : > { %947 = vmatprep.mubr.msk.bf16.mxu0 %vm1108_vm1, %v1107_v1  ;;  %975 = vmatprep.mubr.msk.bf16.mxu1 %vm1108_vm1, %v1107_v1 }
  0x48   : > { %948 = vmatmul.mubr.msk.bf16.gmra.mxu0 %vm288_vm2, %v1042_v15  ;;  %976 = vmatmul.mubr.msk.bf16.gmra.mxu1 %vm288_vm2, %v1043_v16 }
  0x49   : > { %951 = vmatprep.mubr.msk.bf16.mxu0 %vm1108_vm1, %v1107_v1 }
  0x50   : > { %952 = vmatmul.mubr.msk.bf16.gmra.mxu0 %vm288_vm2, %v1044_v17 }
  0xe0   : > { %v366_v19 = vpop.f32.mrf.mxu0  ;;  %v422_v20 = vpop.f32.mrf.mxu1 }
  0xe1   : > { %v367_v21 = vadd.f32 %v1237_v18, %v366_v19  ;;  %v423_v22 = vadd.f32 %v1237_v18, %v422_v20 }
  0xe2   : > { %v929_v23 = vpop.f32.mrf.mxu0  ;;  %v957_v24 = vpop.f32.mrf.mxu1 }
  0xe3   : > { %vm482_vm3 = vcmp.gt.f32.partialorder %v423_v22, 0.0  ;;  %v507_v25 = vmul.f32 0.01, %v423_v22  ;;  %v493_v26 = vmul.f32 0.01, %v367_v21  ;;  %vm468_vm4 = vcmp.gt.f32.partialorder %v367_v21, 0.0 }
  0xe4   : > { %v369_v27 = vpop.f32.mrf.mxu0  ;;  %v425_v28 = vpop.f32.mrf.mxu1 }
  0xe5   : > { %v370_v29 = vadd.f32 %v1237_v18, %v369_v27  ;;  %v426_v30 = vadd.f32 %v1237_v18, %v425_v28  ;;  %v532_v32 = vsel %vm482_vm3, %v423_v22, %v507_v25  ;;  %v518_v36 = vsel %vm468_vm4, %v367_v21, %v493_v26 }
  0xe6   : > { %v930_v31 = vpop.f32.mrf.mxu0  ;;  %v958_v33 = vpop.f32.mrf.mxu1 }
  0xe7   : > { %vm469_vm5 = vcmp.gt.f32.partialorder %v370_v29, 0.0  ;;  %v494_v34 = vmul.f32 0.01, %v370_v29  ;;  %vm483_vm6 = vcmp.gt.f32.partialorder %v426_v30, 0.0  ;;  %v508_v35 = vmul.f32 0.01, %v426_v30 }
  0xe8   : > { %v374_v37 = vpop.f32.mrf.mxu0  ;;  %v430_v38 = vpop.f32.mrf.mxu1 }
  0xe9   : > { %v519_v39 = vsel %vm469_vm5, %v370_v29, %v494_v34  ;;  %v375_v40 = vadd.f32 %v1237_v18, %v374_v37  ;;  %v533_v41 = vsel %vm483_vm6, %v426_v30, %v508_v35  ;;  %v431_v42 = vadd.f32 %v1237_v18, %v430_v38 }
  0xea   : > { %v837_v43 = vpack.c.bf16 %v519_v39, %v518_v36  ;;  %v933_v44 = vpop.f32.mrf.mxu0  ;;  %v872_v45 = vpack.c.bf16 %v533_v41, %v532_v32  ;;  %v961_v46 = vpop.f32.mrf.mxu1 }
  0xeb   : > { %vm484_vm7 = vcmp.gt.f32.partialorder %v431_v42, 0.0  ;;  %v509_v47 = vmul.f32 0.01, %v431_v42  ;;  %v495_v48 = vmul.f32 0.01, %v375_v40  ;;  %vm470_vm8 = vcmp.gt.f32.partialorder %v375_v40, 0.0 }
  0xec   : > { %838 = vst [vmem:[%s1248_s17] sm:$0xff] %v837_v43   ;;  %900 = vst [vmem:[%s1248_s17 + $0x38] sm:$0xff] %v872_v45   ;;  %v377_v49 = vpop.f32.mrf.mxu0  ;;  %v433_v50 = vpop.f32.mrf.mxu1 }
  0xed   : > { %v378_v51 = vadd.f32 %v1237_v18, %v377_v49  ;;  %v434_v52 = vadd.f32 %v1237_v18, %v433_v50  ;;  %v534_v54 = vsel %vm484_vm7, %v431_v42, %v509_v47  ;;  %v520_v58 = vsel %vm470_vm8, %v375_v40, %v495_v48 }
  0xee   : > { %v934_v53 = vpop.f32.mrf.mxu0  ;;  %v962_v55 = vpop.f32.mrf.mxu1 }
  0xef   : > { %vm471_vm9 = vcmp.gt.f32.partialorder %v378_v51, 0.0  ;;  %v496_v56 = vmul.f32 0.01, %v378_v51  ;;  %vm485_vm10 = vcmp.gt.f32.partialorder %v434_v52, 0.0  ;;  %v510_v57 = vmul.f32 0.01, %v434_v52 }
  0xf0   : > { %v382_v59 = vpop.f32.mrf.mxu0  ;;  %v438_v60 = vpop.f32.mrf.mxu1 }
  0xf1   : > { %v521_v61 = vsel %vm471_vm9, %v378_v51, %v496_v56  ;;  %v383_v62 = vadd.f32 %v1237_v18, %v382_v59  ;;  %v535_v63 = vsel %vm485_vm10, %v434_v52, %v510_v57  ;;  %v439_v0 = vadd.f32 %v1237_v18, %v438_v60 }
  0xf2   : > { %v842_v1 = vpack.c.bf16 %v521_v61, %v520_v58  ;;  %v937_v2 = vpop.f32.mrf.mxu0  ;;  %v877_v3 = vpack.c.bf16 %v535_v63, %v534_v54  ;;  %v965_v4 = vpop.f32.mrf.mxu1 }
  0xf3   : > { %vm486_vm11 = vcmp.gt.f32.partialorder %v439_v0, 0.0  ;;  %v511_v5 = vmul.f32 0.01, %v439_v0  ;;  %v497_v6 = vmul.f32 0.01, %v383_v62  ;;  %vm472_vm12 = vcmp.gt.f32.partialorder %v383_v62, 0.0 }
  0xf4   : > { %894 = vst [vmem:[%s1248_s17 + $0x8] sm:$0xff] %v842_v1   ;;  %901 = vst [vmem:[%s1248_s17 + $0x40] sm:$0xff] %v877_v3   ;;  %v385_v7 = vpop.f32.mrf.mxu0  ;;  %v441_v8 = vpop.f32.mrf.mxu1 }
  0xf5   : > { %v386_v9 = vadd.f32 %v1237_v18, %v385_v7  ;;  %v442_v10 = vadd.f32 %v1237_v18, %v441_v8  ;;  %v536_v12 = vsel %vm486_vm11, %v439_v0, %v511_v5  ;;  %v522_v16 = vsel %vm472_vm12, %v383_v62, %v497_v6 }
  0xf6   : > { %v938_v11 = vpop.f32.mrf.mxu0  ;;  %v966_v13 = vpop.f32.mrf.mxu1 }
  0xf7   : > { %vm473_vm13 = vcmp.gt.f32.partialorder %v386_v9, 0.0  ;;  %v498_v14 = vmul.f32 0.01, %v386_v9  ;;  %vm487_vm14 = vcmp.gt.f32.partialorder %v442_v10, 0.0  ;;  %v512_v15 = vmul.f32 0.01, %v442_v10 }
  0xf8   : > { %v390_v17 = vpop.f32.mrf.mxu0  ;;  %v446_v19 = vpop.f32.mrf.mxu1 }
  0xf9   : > { %v523_v20 = vsel %vm473_vm13, %v386_v9, %v498_v14  ;;  %v391_v21 = vadd.f32 %v1237_v18, %v390_v17  ;;  %v537_v22 = vsel %vm487_vm14, %v442_v10, %v512_v15  ;;  %v447_v23 = vadd.f32 %v1237_v18, %v446_v19 }
  0xfa   : > { %v847_v24 = vpack.c.bf16 %v523_v20, %v522_v16  ;;  %v941_v25 = vpop.f32.mrf.mxu0  ;;  %v882_v26 = vpack.c.bf16 %v537_v22, %v536_v12  ;;  %v969_v27 = vpop.f32.mrf.mxu1 }
  0xfb   : > { %vm488_vm15 = vcmp.gt.f32.partialorder %v447_v23, 0.0  ;;  %v513_v28 = vmul.f32 0.01, %v447_v23  ;;  %v499_v29 = vmul.f32 0.01, %v391_v21  ;;  %vm474_vm0 = vcmp.gt.f32.partialorder %v391_v21, 0.0 }
  0xfc   : > { %895 = vst [vmem:[%s1248_s17 + $0x10] sm:$0xff] %v847_v24   ;;  %902 = vst [vmem:[%s1248_s17 + $0x48] sm:$0xff] %v882_v26   ;;  %v393_v30 = vpop.f32.mrf.mxu0  ;;  %v449_v31 = vpop.f32.mrf.mxu1 }
  0xfd   : > { %v394_v32 = vadd.f32 %v1237_v18, %v393_v30  ;;  %v450_v33 = vadd.f32 %v1237_v18, %v449_v31  ;;  %v538_v35 = vsel %vm488_vm15, %v447_v23, %v513_v28  ;;  %v524_v39 = vsel %vm474_vm0, %v391_v21, %v499_v29 }
  0xfe   : > { %v942_v34 = vpop.f32.mrf.mxu0  ;;  %v970_v36 = vpop.f32.mrf.mxu1 }
  0xff   : > { %vm475_vm1 = vcmp.gt.f32.partialorder %v394_v32, 0.0  ;;  %v500_v37 = vmul.f32 0.01, %v394_v32  ;;  %vm489_vm2 = vcmp.gt.f32.partialorder %v450_v33, 0.0  ;;  %v514_v38 = vmul.f32 0.01, %v450_v33 }
 0x100   : > { %v398_v40 = vpop.f32.mrf.mxu0  ;;  %v454_v41 = vpop.f32.mrf.mxu1 }
 0x101   : > { %v525_v42 = vsel %vm475_vm1, %v394_v32, %v500_v37  ;;  %v399_v43 = vadd.f32 %v1237_v18, %v398_v40  ;;  %v539_v44 = vsel %vm489_vm2, %v450_v33, %v514_v38  ;;  %v455_v45 = vadd.f32 %v1237_v18, %v454_v41 }
 0x102   : > { %v852_v46 = vpack.c.bf16 %v525_v42, %v524_v39  ;;  %v945_v47 = vpop.f32.mrf.mxu0  ;;  %v887_v48 = vpack.c.bf16 %v539_v44, %v538_v35  ;;  %v973_v49 = vpop.f32.mrf.mxu1 }
 0x103   : > { %vm490_vm3 = vcmp.gt.f32.partialorder %v455_v45, 0.0  ;;  %v515_v50 = vmul.f32 0.01, %v455_v45  ;;  %v501_v51 = vmul.f32 0.01, %v399_v43  ;;  %vm476_vm4 = vcmp.gt.f32.partialorder %v399_v43, 0.0 }
 0x104   : > { %896 = vst [vmem:[%s1248_s17 + $0x18] sm:$0xff] %v852_v46   ;;  %903 = vst [vmem:[%s1248_s17 + $0x50] sm:$0xff] %v887_v48   ;;  %v401_v52 = vpop.f32.mrf.mxu0  ;;  %v457_v53 = vpop.f32.mrf.mxu1 }
 0x105   : > { %v402_v54 = vadd.f32 %v1237_v18, %v401_v52  ;;  %v458_v55 = vadd.f32 %v1237_v18, %v457_v53  ;;  %v540_v57 = vsel %vm490_vm3, %v455_v45, %v515_v50  ;;  %v526_v61 = vsel %vm476_vm4, %v399_v43, %v501_v51 }
 0x106   : > { %v946_v56 = vpop.f32.mrf.mxu0  ;;  %v974_v58 = vpop.f32.mrf.mxu1 }
 0x107   : > { %vm477_vm5 = vcmp.gt.f32.partialorder %v402_v54, 0.0  ;;  %v502_v59 = vmul.f32 0.01, %v402_v54  ;;  %vm491_vm6 = vcmp.gt.f32.partialorder %v458_v55, 0.0  ;;  %v516_v60 = vmul.f32 0.01, %v458_v55 }
 0x108   : > { %v406_v62 = vpop.f32.mrf.mxu0  ;;  %v462_v63 = vpop.f32.mrf.mxu1 }
 0x109   : > { %v527_v0 = vsel %vm477_vm5, %v402_v54, %v502_v59  ;;  %v407_v1 = vadd.f32 %v1237_v18, %v406_v62  ;;  %v541_v2 = vsel %vm491_vm6, %v458_v55, %v516_v60  ;;  %v463_v3 = vadd.f32 %v1237_v18, %v462_v63 }
 0x10a   : > { %v857_v4 = vpack.c.bf16 %v527_v0, %v526_v61  ;;  %v949_v5 = vpop.f32.mrf.mxu0  ;;  %v892_v6 = vpack.c.bf16 %v541_v2, %v540_v57  ;;  %v977_v7 = vpop.f32.mrf.mxu1 }
 0x10b   : > { %vm492_vm7 = vcmp.gt.f32.partialorder %v463_v3, 0.0  ;;  %v517_v8 = vmul.f32 0.01, %v463_v3  ;;  %v503_v11 = vmul.f32 0.01, %v407_v1  ;;  %vm478_vm8 = vcmp.gt.f32.partialorder %v407_v1, 0.0 }
 0x10c   : > { %897 = vst [vmem:[%s1248_s17 + $0x20] sm:$0xff] %v857_v4   ;;  %904 = vst [vmem:[%s1248_s17 + $0x58] sm:$0xff] %v892_v6   ;;  %v409_v9 = vpop.f32.mrf.mxu0  ;;  %v465_v10 = vpop.f32.mrf.mxu1 }
 0x10d   : > { %v410_v12 = vadd.f32 %v1237_v18, %v409_v9  ;;  %v542_v13 = vsel %vm492_vm7, %v463_v3, %v517_v8  ;;  %v528_v20 = vsel %vm478_vm8, %v407_v1, %v503_v11 }
 0x10e   : > { %v950_v14 = vpop.f32.mrf.mxu0  ;;  %v832_v15 = vpack.c.bf16 %v542_v13, %v542_v13  ;;  %v978_v16 = vpop.f32.mrf.mxu1 }
 0x10f   : > { %vm479_vm9 = vcmp.gt.f32.partialorder %v410_v12, 0.0  ;;  %v504_v17 = vmul.f32 0.01, %v410_v12 }
 0x110   : > { %668 = vst [vmem:[%s1248_s17 + $0x60] sm:$0xf] %v832_v15  ;;  %v414_v19 = vpop.f32.mrf.mxu0 }
 0x111   : > { %v529_v21 = vsel %vm479_vm9, %v410_v12, %v504_v17  ;;  %v415_v22 = vadd.f32 %v1237_v18, %v414_v19 }
 0x112   : > { %v862_v23 = vpack.c.bf16 %v529_v21, %v528_v20  ;;  %v953_v24 = vpop.f32.mrf.mxu0 }
 0x113   : > { %v505_v26 = vmul.f32 0.01, %v415_v22  ;;  %vm480_vm10 = vcmp.gt.f32.partialorder %v415_v22, 0.0 }
 0x114   : > { %898 = vst [vmem:[%s1248_s17 + $0x28] sm:$0xff] %v862_v23   ;;  %v417_v25 = vpop.f32.mrf.mxu0 }
 0x115   : > { %v418_v27 = vadd.f32 %v1237_v18, %v417_v25  ;;  %v530_v30 = vsel %vm480_vm10, %v415_v22, %v505_v26 }
 0x116   : > { %v954_v28 = vpop.f32.mrf.mxu0 }
 0x117   : > { %vm481_vm11 = vcmp.gt.f32.partialorder %v418_v27, 0.0  ;;  %v506_v29 = vmul.f32 0.01, %v418_v27 }
 0x119   : > { %v531_v31 = vsel %vm481_vm11, %v418_v27, %v506_v29 }
 0x11a   : > { %v867_v18 = vpack.c.bf16 %v531_v31, %v530_v30 }
 0x11c   : > { %899 = vst [vmem:[%s1248_s17 + $0x30] sm:$0xff] %v867_v18  }
 0x11d   : > { %1058 = shalt.err (!%p1055_p3)
}
 0x11e   : > { %s1059_s4 = scalar_lea.hbm %s1286_s26, 1600  ;;  %s1063_s7 = scalar_lea.hbm %s1336_s3, 3200 }
 0x11f   : > { %p1060_p4 = scmp.ne.s32.totalorder %s1286_s26, %s1059_s4  ;;  %p1064_p9 = scmp.lt.s32.totalorder %s1286_s26, %s1336_s3 }
 0x120   : > { %p1065_p10 = scmp.lt.s32.totalorder %s1063_s7, %s1059_s4 }
 0x121   : > { %p1061_p7 = pnand %p1060_p4, %p1170_p5 }
 0x122   : > { %p1066_p11 = por %p1065_p10, %p1064_p9 }
 0x123   : > { %p1062_p8 = pneg %p1061_p7 }
 0x125   : > { %p1067_p12 = pnand %p1066_p11, %p1062_p8 }
 0x127   : > { %1070 = shalt.err (!%p1067_p12)
}
 0x128   : > { %s1110_s10 = smov 64   ;;  %s1111_s11 = smov 4  }
 0x129   : > { %986 = dma.vmem_to_hbm [thread:$0]  (%p1170_p5), %s1288_s20, 1600, %s1286_s26, %s1293_s16, %s1110_s10, %s1110_s10, %s1111_s11  }
 0x12a PF: > { %p992_p13 = scmp.ge.s32.totalorder %s1105_s15, 2  ;;  %s698_s17 = sand.u32 1, %s1093_s12  }
 0x12b   : > { %s699_s19 = scalar_lea.sflag [#allocation3], %s698_s17 }
 0x12c   : > { %p989_p0 = pnand %p992_p13, %p1174_p6 }
 0x12e   : > { %p990_p1 = pneg %p989_p0 }
 0x130   : > { %1088 = dma.done.wait (%p990_p1), %s699_s19, 1600  }
 0x131   : > { %1090 = vsyncadd (%p990_p1), %s699_s19, 4294965696  ;;  %p13_p2 = scmp.ge.s32.totalorder %s1157_s18, 4   ;;  %s1339_s12 = smov %s1097_s13 }
 0x132   : > { %s1340_s13 = smov %s1101_s14  ;;  %s1341_s14 = smov %s1168_s21 }
 0x133   : > { %s1342_s15 = smov %s1157_s18  ;;  %15 = sbr.rel (!%p13_p2) target bundleno = 3 (0x3), region = 67 }
 0x138   :  { %704 = vsyncpa [#allocation3], 1 }
 0x139   :  { %706 = vsyncpa [#allocation3 + $0x1], 1 }

</bundles_post_ra>
